<compile_context>
chip_gen: v6e
topology: v6e:2x2x1
jax: 0.10.0
libtpu: 0.0.40
codegen_flags: <defaults>
</compile_context>

<pallas_src>
import math

import jax
import jax.numpy as jnp
from jax.experimental import pallas as pl
from jax.experimental.pallas import tpu as pltpu

_LANES = 128
_SUBLANES = 8
# ~2 MiB per block: near the measured HBM-roofline plateau, and the
# double-buffered in+out working set (~8 MiB) fits every generation's
# default scoped-VMEM limit (v5e 16 MiB, v6e/v7x 32 MiB).
_TARGET_BLOCK_BYTES = 2 * 1024 * 1024


def _drop_path_kernel(scale_ref, x_ref, o_ref):
    # scale_ref: (tb, 1) f32, per-sample scale (0.0 or 1/keep_prob).
    # Pure broadcast multiply over the (tb, tn) tile; kernel is HBM-bound.
    o_ref[...] = (x_ref[...] * scale_ref[...]).astype(o_ref.dtype)


def _choose_tiles(batch, feat, itemsize, target_bytes):
    """Pick (tb, tn) obeying the (8, 128) block rule, sized by a byte budget."""
    if batch <= _SUBLANES:
        tb = batch                       # equal to full dim -> always legal
    else:
        per_row = max(1, feat * itemsize)
        tb = max(
            _SUBLANES,
            min(batch // _SUBLANES, target_bytes // (_SUBLANES * per_row))
            * _SUBLANES,
        )                                # multiple of 8
    tn_budget = max(_LANES, target_bytes // (tb * itemsize))
    if tn_budget >= feat:
        tn = feat                        # equal to full dim -> always legal
    else:
        tn = (tn_budget // _LANES) * _LANES   # multiple of 128
    return tb, tn


def drop_path_pallas(x, drop_prob: float = 0.0, training: bool = False,
                     seed: int = 0, *, donate_x: bool = False,
                     target_block_bytes: int = _TARGET_BLOCK_BYTES):
    """Pallas implementation of drop_path (per-sample stochastic depth)."""
    if drop_prob == 0.0 or not training:
        return x
    keep_prob = 1.0 - float(drop_prob)

    B = x.shape[0]
    N = math.prod(x.shape[1:]) if x.ndim > 1 else 1

    # Per-sample mask (torch semantics: floor(keep_prob + U[0,1))), computed
    # once outside the kernel and pre-scaled by 1/keep_prob.
    key = jax.random.PRNGKey(seed)
    u = jax.random.uniform(key, (B,), dtype=jnp.float32)
    mask = jnp.floor(keep_prob + u)
    scale = (mask * (1.0 / keep_prob)).reshape(B, 1)          # (B, 1) f32

    # Contiguous (B, N) view: free reshape, no pad, no post-slice.
    x2 = x.reshape(B, N)
    itemsize = jnp.dtype(x.dtype).itemsize
    tb, tn = _choose_tiles(B, N, itemsize, target_block_bytes)
    grid = (pl.cdiv(B, tb), pl.cdiv(N, tn))

    out2 = pl.pallas_call(
        _drop_path_kernel,
        out_shape=jax.ShapeDtypeStruct((B, N), x.dtype),
        grid=grid,
        in_specs=[
            pl.BlockSpec((tb, 1), lambda i, j: (i, 0)),       # per-sample scale
            pl.BlockSpec((tb, tn), lambda i, j: (i, j)),      # x tile
        ],
        out_specs=pl.BlockSpec((tb, tn), lambda i, j: (i, j)),
        compiler_params=pltpu.CompilerParams(
            # No accumulator / cross-step dependency: both axes are legally
            # parallel (lets the v7x megacore shard either one).
            dimension_semantics=("parallel", "parallel"),
        ),
        cost_estimate=pl.CostEstimate(
            flops=B * N,
            transcendentals=0,
            bytes_accessed=2 * B * N * itemsize + B * 4,
        ),
        input_output_aliases={1: 0} if donate_x else {},
    )(scale, x2)

    return out2.reshape(x.shape)


def _drop_path_ref(x, drop_prob, seed):
    """Pure-JAX reference with the same mask derivation as the wrapper."""
    kp = 1.0 - drop_prob
    u = jax.random.uniform(jax.random.PRNGKey(seed), (x.shape[0],),
                           dtype=jnp.float32)
    m = jnp.floor(kp + u).reshape((x.shape[0],) + (1,) * (x.ndim - 1))
    return (x / kp) * m


if __name__ == "__main__":
    B, C, H, W = 2, 4, 16, 16
    x = jax.random.normal(jax.random.PRNGKey(0), (B, C, H, W),
                          dtype=jnp.float32)
    drop_prob = 0.5
    keep_prob = 1.0 - drop_prob
    seed = 1234

    # Inference / drop_prob == 0: identity.
    assert jnp.array_equal(drop_path_pallas(x, drop_prob, training=False), x)
    assert jnp.array_equal(drop_path_pallas(x, 0.0, training=True), x)

    # Training path, lane-aligned feature size (N = 1024).
    y = jax.block_until_ready(drop_path_pallas(x, drop_prob, True, seed))
    y_ref = _drop_path_ref(x, drop_prob, seed)
    assert jnp.allclose(y, y_ref, atol=1e-5), "mismatch vs reference drop_path"

    # Each sample is either fully dropped or scaled by 1/keep_prob.
    for b in range(B):
        kept = bool(jnp.allclose(y[b], x[b] / keep_prob, atol=1e-5))
        dropped = bool(jnp.allclose(y[b], jnp.zeros_like(y[b]), atol=1e-6))
        assert kept or dropped, "sample must be kept (scaled) or fully dropped"

    # Ragged feature dim (N = 315, not a multiple of 128) with a tiny block
    # budget so the last feature block is partial (masked writeback path).
    x2 = jax.random.normal(jax.random.PRNGKey(1), (3, 5, 7, 9),
                           dtype=jnp.float32)
    y2 = jax.block_until_ready(
        drop_path_pallas(x2, 0.3, True, seed=7, target_block_bytes=2048))
    assert jnp.allclose(y2, _drop_path_ref(x2, 0.3, 7), atol=1e-5)

    # B > 8 (tb = 8, partial last batch block) + bf16 input.
    x3 = jax.random.normal(jax.random.PRNGKey(2), (10, 4, 8, 8),
                           dtype=jnp.bfloat16)
    y3 = jax.block_until_ready(drop_path_pallas(x3, 0.25, True, seed=3))
    y3_ref = _drop_path_ref(x3.astype(jnp.float32), 0.25, 3)
    assert jnp.allclose(y3.astype(jnp.float32), y3_ref, atol=2e-2, rtol=2e-2)

    # Donated-input variant (input_output_aliases) compiles and matches.
    y4 = jax.block_until_ready(
        drop_path_pallas(jnp.array(x), drop_prob, True, seed, donate_x=True))
    assert jnp.allclose(y4, y_ref, atol=1e-5)

    print("KERNEL_OK")
</pallas_src>

<mosaic_0001>
module attributes {stable_mosaic.version = 11 : i64} {
  func.func @_drop_path_kernel(%arg0: i32, %arg1: i32, %arg2: memref<2x1xf32, #tpu.memory_space<vmem>>, %arg3: memref<2x1024xf32, #tpu.memory_space<vmem>>, %arg4: memref<2x1024xf32, #tpu.memory_space<vmem>>) attributes {dimension_semantics = [#tpu.dimension_semantics<parallel>, #tpu.dimension_semantics<parallel>], iteration_bounds = array<i64: 1, 1>, scalar_prefetch = 0 : i64, scratch_operands = 0 : i64, tpu.core_type = #tpu.core_type<tc>, window_params = [{transform_indices = @transform_0, window_bounds = array<i64: 2, 1>}, {transform_indices = @transform_1, window_bounds = array<i64: 2, 1024>}, {transform_indices = @transform_2, window_bounds = array<i64: 2, 1024>}]} {
    %c0 = arith.constant 0 : index
    %c0_0 = arith.constant 0 : index
    %0 = vector.load %arg3[%c0, %c0_0] : memref<2x1024xf32, #tpu.memory_space<vmem>>, vector<2x1024xf32>
    %c0_1 = arith.constant 0 : index
    %c0_2 = arith.constant 0 : index
    %1 = vector.load %arg2[%c0_1, %c0_2] : memref<2x1xf32, #tpu.memory_space<vmem>>, vector<2x1xf32>
    %2 = vector.broadcast %1 : vector<2x1xf32> to vector<2x1024xf32>
    %3 = arith.mulf %0, %2 : vector<2x1024xf32>
    %c0_3 = arith.constant 0 : index
    %c0_4 = arith.constant 0 : index
    %4 = vector.load %arg4[%c0_3, %c0_4] : memref<2x1024xf32, #tpu.memory_space<vmem>>, vector<2x1024xf32>
    tpu.vector_store %arg4[%c0_3, %c0_4], %3 {strides = array<i32>} : memref<2x1024xf32, #tpu.memory_space<vmem>>, vector<2x1024xf32>,
    return
  }
  func.func @transform_0(%arg0: i32, %arg1: i32) -> (i32, i32) {
    %c0_i32 = arith.constant 0 : i32
    %c0_i32_0 = arith.constant 0 : i32
    return %arg0, %c0_i32 : i32, i32
  }
  func.func @transform_1(%arg0: i32, %arg1: i32) -> (i32, i32) {
    %c0_i32 = arith.constant 0 : i32
    return %arg0, %arg1 : i32, i32
  }
  func.func @transform_2(%arg0: i32, %arg1: i32) -> (i32, i32) {
    %c0_i32 = arith.constant 0 : i32
    return %arg0, %arg1 : i32, i32
  }
}

</mosaic_0001>

<bundles_post_ra>
// kernel: tpu_custom_call.1
= control target key start
LH: loop header
LB: loop body
LE: loop exit
PB: predicated region body
PF: predicated region fallthrough
CT: control target
= control target key end

     0   :  { %7 = vsyncpa [#allocation3], 0  ;;  %s135_s0 = inlined_call_operand.vmem [shape: f32[2,1], index: 0, kind: input, shape index: {}]   ;;  %s136_s1 = inlined_call_operand.hbm [shape: f32[2,1024], index: 1, kind: input, shape index: {}]   ;;  %s137_s2 = inlined_call_operand.hbm [shape: f32[2,1024], index: 2, kind: output, shape index: {}]  }
   0x1   :  { %8 = vsyncpa [#allocation4], 0  ;;  %s107_s9 = smov [#allocation2]  }
   0x2   :  { %s17_s10 = sshll.u32 %s107_s9, 4  ;;  %s18_s10 = int_to_ptr.vmem [resolvable:$true] %s17_s10 }
   0x3   :  { %s71_s11 = scalar_lea.vmem %s18_s10, 256  ;;  %p76_p1 = scmp.lt.s32.totalorder %s18_s10, %s18_s10 }
   0x4   :  { %p72_p0 = scmp.ne.s32.totalorder %s18_s10, %s71_s11  ;;  %p77_p2 = scmp.lt.s32.totalorder %s71_s11, %s71_s11 }
   0x6   :  { %p78_p3 = por %p77_p2, %p76_p1 }
   0x8   :  { %p79_p4 = pnand %p78_p3, %p72_p0 }
   0xa   :  { %82 = shalt.err (!%p79_p4)
}
   0xb   :  { %20 = dma.hbm_to_vmem [thread:$0]  %s136_s1, 256, %s18_s10, [#allocation3]  }
   0xc   :  { %103 = dma.done.wait [#allocation3], 256  }
   0xd   :  { %104 = vsyncadd [#allocation3], 4294967040  ;;  %v108_v0 = vmov 0   ;;  %v26_v1 = vld [vmem:[%s135_s0] sm:$0x3]  ;;  %v34_v4 = vlaneseq  ;;  %v25_v10 = vld [vmem:[#allocation2 + $0x8] sm:$0xff] }
   0xe   :  { %62 = vset.pattern.permute.xlu0 %v108_v0  ;;  %v109_v2 = vmov 269488144   ;;  %v24_v9 = vld [vmem:[#allocation2] sm:$0xff]  ;;  %s110_s16 = smov [#allocation5]  }
   0xf   :  { %29 = vperm.xlu0 %62, %v26_v1   ;;  %v32_v3 = vunpack.c.l.s4 %v109_v2  ;;  %v35_v6 = vshrl.u32 %v34_v4, 7  ;;  %s49_s1 = sshll.u32 %s110_s16, 4  ;;  %s50_s1 = int_to_ptr.vmem [resolvable:$true] %s49_s1 }
  0x10   :  { %s83_s17 = scalar_lea.vmem %s50_s1, 256  ;;  %p88_p6 = scmp.lt.s32.totalorder %s50_s1, %s50_s1 }
  0x11   :  { %v33_v5 = vunpack.c.0.s8 %v32_v3  ;;  %p84_p5 = scmp.ne.s32.totalorder %s50_s1, %s83_s17  ;;  %p89_p7 = scmp.lt.s32.totalorder %s83_s17, %s83_s17 }
  0x13   :  { %v36_v7 = vsub.s32 %v33_v5, %v35_v6  ;;  %p90_p8 = por %p89_p7, %p88_p6 }
  0x15   :  { %p91_p9 = pnand %p90_p8, %p84_p5 }
  0x8a   :  { %v30_v8 = vpop.permute.xlu0 %29 }
  0x8b   :  { %v37_v11 = vrot.slane %v30_v8, %v36_v7 }
  0x8d   :  { %v39_v12 = vmul.f32 %v37_v11, %v24_v9  ;;  %v40_v13 = vmul.f32 %v37_v11, %v25_v10 }
  0x8f   :  { %41 = vst [vmem:[#allocation5] sm:$0xff] %v39_v12  ;;  %42 = vst [vmem:[#allocation5 + $0x8] sm:$0xff] %v40_v13 }
  0x90   :  { %94 = shalt.err (!%p91_p9)
}
  0x91   :  { %52 = dma.vmem_to_hbm [thread:$0]  %s50_s1, 256, %s137_s2, [#allocation4]  }
  0x92   :  { %105 = dma.done.wait [#allocation4], 256  }
  0x93   :  { %106 = vsyncadd [#allocation4], 4294967040 }
  0x94   :  { %56 = vsyncpa [#allocation3], 1 }
  0x95   :  { %57 = vsyncpa [#allocation4], 1 }

</bundles_post_ra>
